<compile_context>
chip_gen: v7x
topology: tpu7x:2x2x1
jax: 0.10.0
libtpu: 0.0.40
codegen_flags: <defaults>
</compile_context>

<pallas_src>
import functools

import jax
import jax.numpy as jnp
from jax.experimental import pallas as pl
from jax.experimental.pallas import tpu as pltpu

_NEG_BIG = -1e30  # effectively -inf for softmax padding, safe in f32 math


def _round_up(x, m):
    return ((x + m - 1) // m) * m


def _mlp_kernel(x_ref, w1_ref, b1_ref, w2_ref, b2_ref, w3_ref, b3_ref, o_ref):
    # x / weights are bf16; all matmuls accumulate in f32 on the MXU.
    x = x_ref[...]                                                    # (TB, in_dim) bf16

    # Layer 1: Linear + ReLU
    h1 = jnp.dot(x, w1_ref[...], preferred_element_type=jnp.float32) + b1_ref[...]
    h1 = jnp.maximum(h1, 0.0).astype(jnp.bfloat16)

    # Layer 2: Linear + ReLU
    h2 = jnp.dot(h1, w2_ref[...], preferred_element_type=jnp.float32) + b2_ref[...]
    h2 = jnp.maximum(h2, 0.0).astype(jnp.bfloat16)

    # Layer 3: Linear (out_dim padded to a multiple of 128; padded logits are
    # ~-inf via the padded bias, so the softmax below ignores them exactly).
    logits = jnp.dot(h2, w3_ref[...], preferred_element_type=jnp.float32) + b3_ref[...]

    # Numerically-stable softmax over the last axis.
    m = jnp.max(logits, axis=-1, keepdims=True)
    e = jnp.exp(logits - m)
    denom = jnp.sum(e, axis=-1, keepdims=True)
    o_ref[...] = (e * pl.reciprocal(denom, approx=True)).astype(o_ref.dtype)


def mlp_forward(x, w1, b1, w2, b2, w3, b3, *, tb=512):
    """Fused MLP forward pass (3 matmuls + ReLUs + softmax) in one Pallas kernel.

    x: (B, in_dim) f32.  Weights are pre-transposed to (in, out); biases (1, out).
    Returns (B, out_dim) f32 softmax probabilities.
    """
    B, in_dim = x.shape
    H = w1.shape[1]
    out_dim = w3.shape[1]

    # ---- layout / tiling decisions ------------------------------------------
    out_pad = _round_up(out_dim, 128)              # lane-dense output stores
    TB = min(tb, _round_up(B, 8))                  # batch tile, multiple of 8
    B_pad = _round_up(B, TB)
    nb = pl.cdiv(B_pad, TB)

    # ---- operand prep (bf16 into the MXU, done once in the wrapper) ---------
    xb = jnp.pad(x, ((0, B_pad - B), (0, 0))).astype(jnp.bfloat16)
    w1b = w1.astype(jnp.bfloat16)
    w2b = w2.astype(jnp.bfloat16)
    w3b = jnp.pad(w3, ((0, 0), (0, out_pad - out_dim))).astype(jnp.bfloat16)
    b3p = jnp.pad(b3, ((0, 0), (0, out_pad - out_dim)), constant_values=_NEG_BIG)

    # ---- specs ---------------------------------------------------------------
    x_spec = pl.BlockSpec((TB, in_dim), lambda i: (i, 0))
    out_spec = pl.BlockSpec((TB, out_pad), lambda i: (i, 0))
    # Weights / biases: same block for every grid step -> DMA'd once, resident.
    resident = lambda shape: pl.BlockSpec(shape, lambda i: (0, 0))

    # ---- cost hint for XLA's scheduler ---------------------------------------
    flops = 2 * B_pad * (in_dim * H + H * H + H * out_pad)
    transcendentals = B_pad * out_pad
    bytes_accessed = (
        xb.size * 2 + w1b.size * 2 + w2b.size * 2 + w3b.size * 2
        + b1.size * 4 + b2.size * 4 + b3p.size * 4
        + B_pad * out_pad * 4
    )

    out = pl.pallas_call(
        _mlp_kernel,
        out_shape=jax.ShapeDtypeStruct((B_pad, out_pad), jnp.float32),
        grid=(nb,),
        in_specs=[
            x_spec,
            resident(w1b.shape), resident(b1.shape),
            resident(w2b.shape), resident(b2.shape),
            resident(w3b.shape), resident(b3p.shape),
        ],
        out_specs=out_spec,
        compiler_params=pltpu.CompilerParams(
            dimension_semantics=("parallel",),  # batch axis -> both TCs on v7x
        ),
        cost_estimate=pl.CostEstimate(
            flops=flops,
            transcendentals=transcendentals,
            bytes_accessed=bytes_accessed,
        ),
    )(xb, w1b, b1, w2b, b2, w3b, b3p)

    return out[:B, :out_dim]


def init_linear_params(key, in_features, out_features):
    """PyTorch-style Linear init: U(-1/sqrt(fan_in), 1/sqrt(fan_in)).

    Weight returned already transposed to (in_features, out_features);
    bias shaped (1, out_features) for clean broadcasting.
    """
    kw, kb = jax.random.split(key)
    bound = 1.0 / jnp.sqrt(jnp.float32(in_features))
    w = jax.random.uniform(kw, (in_features, out_features), jnp.float32,
                           minval=-bound, maxval=bound)
    b = jax.random.uniform(kb, (1, out_features), jnp.float32,
                           minval=-bound, maxval=bound)
    return w, b


if __name__ == "__main__":
    # Small shapes consistent with the module: MLP(in_dim=16, out_dim=8),
    # hidden_size=256 (the module's default, and MXU/lane aligned).
    batch, in_dim, hidden, out_dim = 2, 16, 256, 8

    key = jax.random.PRNGKey(0)
    kx, k1, k2, k3 = jax.random.split(key, 4)

    x = jax.random.normal(kx, (batch, in_dim), jnp.float32)
    w1, b1 = init_linear_params(k1, in_dim, hidden)
    w2, b2 = init_linear_params(k2, hidden, hidden)
    w3, b3 = init_linear_params(k3, hidden, out_dim)

    out = mlp_forward(x, w1, b1, w2, b2, w3, b3)
    out = jax.block_until_ready(out)
    assert out.shape == (batch, out_dim)

    # Reference 1: plain-JAX math mirroring the kernel's bf16-operand / f32-acc
    # arithmetic (tight tolerance).
    def bf16_ref(x, w1, b1, w2, b2, w3, b3):
        h1 = jnp.maximum(
            jnp.dot(x.astype(jnp.bfloat16), w1.astype(jnp.bfloat16),
                    preferred_element_type=jnp.float32) + b1, 0.0)
        h2 = jnp.maximum(
            jnp.dot(h1.astype(jnp.bfloat16), w2.astype(jnp.bfloat16),
                    preferred_element_type=jnp.float32) + b2, 0.0)
        logits = jnp.dot(h2.astype(jnp.bfloat16), w3.astype(jnp.bfloat16),
                         preferred_element_type=jnp.float32) + b3
        return jax.nn.softmax(logits, axis=-1)

    ref_bf16 = bf16_ref(x, w1, b1, w2, b2, w3, b3)
    assert jnp.allclose(out, ref_bf16, atol=2e-3, rtol=2e-3)

    # Reference 2: full-f32 math matching the PyTorch module semantics
    # (looser tolerance, accounts for the bf16 MXU operands).
    h1 = jnp.maximum(x @ w1 + b1, 0.0)
    h2 = jnp.maximum(h1 @ w2 + b2, 0.0)
    ref_f32 = jax.nn.softmax(h2 @ w3 + b3, axis=-1)
    assert jnp.allclose(out, ref_f32, atol=3e-2)

    # Softmax rows sum to ~1 (approx reciprocal on the EUP).
    assert jnp.allclose(jnp.sum(out, axis=-1), 1.0, atol=2e-3)

    print("KERNEL_OK")
</pallas_src>

<mosaic_0001>
module attributes {stable_mosaic.version = 11 : i64} {
  func.func @_mlp_kernel(%arg0: i32, %arg1: memref<8x16xbf16, #tpu.memory_space<vmem>>, %arg2: memref<16x256xbf16, #tpu.memory_space<vmem>>, %arg3: memref<1x256xf32, #tpu.memory_space<vmem>>, %arg4: memref<256x256xbf16, #tpu.memory_space<vmem>>, %arg5: memref<1x256xf32, #tpu.memory_space<vmem>>, %arg6: memref<256x128xbf16, #tpu.memory_space<vmem>>, %arg7: memref<1x128xf32, #tpu.memory_space<vmem>>, %arg8: memref<8x128xf32, #tpu.memory_space<vmem>>) attributes {dimension_semantics = [#tpu.dimension_semantics<parallel>], iteration_bounds = array<i64: 1>, scalar_prefetch = 0 : i64, scratch_operands = 0 : i64, tpu.core_type = #tpu.core_type<tc>, window_params = [{transform_indices = @transform_0, window_bounds = array<i64: 8, 16>}, {pipeline_mode = #tpu.pipeline_mode<synchronous>, transform_indices = @transform_1, window_bounds = array<i64: 16, 256>}, {pipeline_mode = #tpu.pipeline_mode<synchronous>, transform_indices = @transform_2, window_bounds = array<i64: 1, 256>}, {pipeline_mode = #tpu.pipeline_mode<synchronous>, transform_indices = @transform_3, window_bounds = array<i64: 256, 256>}, {pipeline_mode = #tpu.pipeline_mode<synchronous>, transform_indices = @transform_4, window_bounds = array<i64: 1, 256>}, {pipeline_mode = #tpu.pipeline_mode<synchronous>, transform_indices = @transform_5, window_bounds = array<i64: 256, 128>}, {pipeline_mode = #tpu.pipeline_mode<synchronous>, transform_indices = @transform_6, window_bounds = array<i64: 1, 128>}, {transform_indices = @transform_7, window_bounds = array<i64: 8, 128>}]} {
    %c0 = arith.constant 0 : index
    %c0_0 = arith.constant 0 : index
    %0 = vector.load %arg1[%c0, %c0_0] : memref<8x16xbf16, #tpu.memory_space<vmem>>, vector<8x16xbf16>
    %c0_1 = arith.constant 0 : index
    %c0_2 = arith.constant 0 : index
    %1 = vector.load %arg2[%c0_1, %c0_2] : memref<16x256xbf16, #tpu.memory_space<vmem>>, vector<16x256xbf16>
    %cst = arith.constant dense<0.000000e+00> : vector<8x256xf32>
    %2 = tpu.matmul %0, %1, %cst {dimension_numbers = #tpu.dot_dimension_numbers<[1], [0], [0], [1], [0, 0, 1, 1], [], []>} : vector<8x16xbf16>, vector<16x256xbf16>, vector<8x256xf32> -> vector<8x256xf32>
    %c0_3 = arith.constant 0 : index
    %c0_4 = arith.constant 0 : index
    %3 = vector.load %arg3[%c0_3, %c0_4] : memref<1x256xf32, #tpu.memory_space<vmem>>, vector<1x256xf32>
    %4 = vector.broadcast %3 : vector<1x256xf32> to vector<8x256xf32>
    %5 = arith.addf %2, %4 : vector<8x256xf32>
    %cst_5 = arith.constant 0.000000e+00 : f32
    %6 = vector.broadcast %cst_5 : f32 to vector<8x256xf32>
    %7 = arith.maximumf %5, %6 : vector<8x256xf32>
    %8 = arith.truncf %7 : vector<8x256xf32> to vector<8x256xbf16>
    %c0_6 = arith.constant 0 : index
    %c0_7 = arith.constant 0 : index
    %9 = vector.load %arg4[%c0_6, %c0_7] : memref<256x256xbf16, #tpu.memory_space<vmem>>, vector<256x256xbf16>
    %cst_8 = arith.constant dense<0.000000e+00> : vector<8x256xf32>
    %10 = tpu.matmul %8, %9, %cst_8 {dimension_numbers = #tpu.dot_dimension_numbers<[1], [0], [0], [1], [0, 0, 1, 1], [], []>} : vector<8x256xbf16>, vector<256x256xbf16>, vector<8x256xf32> -> vector<8x256xf32>
    %c0_9 = arith.constant 0 : index
    %c0_10 = arith.constant 0 : index
    %11 = vector.load %arg5[%c0_9, %c0_10] : memref<1x256xf32, #tpu.memory_space<vmem>>, vector<1x256xf32>
    %12 = vector.broadcast %11 : vector<1x256xf32> to vector<8x256xf32>
    %13 = arith.addf %10, %12 : vector<8x256xf32>
    %cst_11 = arith.constant 0.000000e+00 : f32
    %14 = vector.broadcast %cst_11 : f32 to vector<8x256xf32>
    %15 = arith.maximumf %13, %14 : vector<8x256xf32>
    %16 = arith.truncf %15 : vector<8x256xf32> to vector<8x256xbf16>
    %c0_12 = arith.constant 0 : index
    %c0_13 = arith.constant 0 : index
    %17 = vector.load %arg6[%c0_12, %c0_13] : memref<256x128xbf16, #tpu.memory_space<vmem>>, vector<256x128xbf16>
    %cst_14 = arith.constant dense<0.000000e+00> : vector<8x128xf32>
    %18 = tpu.matmul %16, %17, %cst_14 {dimension_numbers = #tpu.dot_dimension_numbers<[1], [0], [0], [1], [0, 0, 1, 1], [], []>} : vector<8x256xbf16>, vector<256x128xbf16>, vector<8x128xf32> -> vector<8x128xf32>
    %c0_15 = arith.constant 0 : index
    %c0_16 = arith.constant 0 : index
    %19 = vector.load %arg7[%c0_15, %c0_16] : memref<1x128xf32, #tpu.memory_space<vmem>>, vector<1x128xf32>
    %20 = vector.broadcast %19 : vector<1x128xf32> to vector<8x128xf32>
    %21 = arith.addf %18, %20 : vector<8x128xf32>
    %cst_17 = arith.constant dense<0xFF800000> : vector<8xf32>
    %22 = vector.multi_reduction <maximumf>, %21, %cst_17 [1] : vector<8x128xf32> to vector<8xf32>
    %23 = vector.shape_cast %22 : vector<8xf32> to vector<8x1xf32>
    %24 = vector.broadcast %23 : vector<8x1xf32> to vector<8x128xf32>
    %25 = arith.subf %21, %24 : vector<8x128xf32>
    %26 = math.exp %25 : vector<8x128xf32>
    %cst_18 = arith.constant dense<0.000000e+00> : vector<8xf32>
    %27 = vector.multi_reduction <add>, %26, %cst_18 [1] : vector<8x128xf32> to vector<8xf32>
    %28 = vector.shape_cast %27 : vector<8xf32> to vector<8x1xf32>
    %29 = tpu.reciprocal %28 {approx = true} : vector<8x1xf32> -> vector<8x1xf32>
    %30 = vector.broadcast %29 : vector<8x1xf32> to vector<8x128xf32>
    %31 = arith.mulf %26, %30 : vector<8x128xf32>
    %c0_19 = arith.constant 0 : index
    %c0_20 = arith.constant 0 : index
    %32 = vector.load %arg8[%c0_19, %c0_20] : memref<8x128xf32, #tpu.memory_space<vmem>>, vector<8x128xf32>
    tpu.vector_store %arg8[%c0_19, %c0_20], %31 {strides = array<i32>} : memref<8x128xf32, #tpu.memory_space<vmem>>, vector<8x128xf32>,
    return
  }
  func.func @transform_0(%arg0: i32) -> (i32, i32) {
    %c0_i32 = arith.constant 0 : i32
    %c0_i32_0 = arith.constant 0 : i32
    return %arg0, %c0_i32 : i32, i32
  }
  func.func @transform_1(%arg0: i32) -> (i32, i32) {
    %c0_i32 = arith.constant 0 : i32
    %c0_i32_0 = arith.constant 0 : i32
    %c0_i32_1 = arith.constant 0 : i32
    return %c0_i32, %c0_i32_0 : i32, i32
  }
  func.func @transform_2(%arg0: i32) -> (i32, i32) {
    %c0_i32 = arith.constant 0 : i32
    %c0_i32_0 = arith.constant 0 : i32
    %c0_i32_1 = arith.constant 0 : i32
    return %c0_i32, %c0_i32_0 : i32, i32
  }
  func.func @transform_3(%arg0: i32) -> (i32, i32) {
    %c0_i32 = arith.constant 0 : i32
    %c0_i32_0 = arith.constant 0 : i32
    %c0_i32_1 = arith.constant 0 : i32
    return %c0_i32, %c0_i32_0 : i32, i32
  }
  func.func @transform_4(%arg0: i32) -> (i32, i32) {
    %c0_i32 = arith.constant 0 : i32
    %c0_i32_0 = arith.constant 0 : i32
    %c0_i32_1 = arith.constant 0 : i32
    return %c0_i32, %c0_i32_0 : i32, i32
  }
  func.func @transform_5(%arg0: i32) -> (i32, i32) {
    %c0_i32 = arith.constant 0 : i32
    %c0_i32_0 = arith.constant 0 : i32
    %c0_i32_1 = arith.constant 0 : i32
    return %c0_i32, %c0_i32_0 : i32, i32
  }
  func.func @transform_6(%arg0: i32) -> (i32, i32) {
    %c0_i32 = arith.constant 0 : i32
    %c0_i32_0 = arith.constant 0 : i32
    %c0_i32_1 = arith.constant 0 : i32
    return %c0_i32, %c0_i32_0 : i32, i32
  }
  func.func @transform_7(%arg0: i32) -> (i32, i32) {
    %c0_i32 = arith.constant 0 : i32
    %c0_i32_0 = arith.constant 0 : i32
    return %arg0, %c0_i32 : i32, i32
  }
}

</mosaic_0001>

<bundles_post_ra>
// kernel: tpu_custom_call.1
= control target key start
LH: loop header
LB: loop body
LE: loop exit
PB: predicated region body
PF: predicated region fallthrough
CT: control target
= control target key end

     0   :  { %12 = vsyncpa [#allocation3], 0  ;;  %s1004_s0 = inlined_call_operand.hbm [shape: bf16[8,16], index: 0, kind: input, shape index: {}]   ;;  %s1005_s1 = inlined_call_operand.hbm [shape: bf16[16,256], index: 1, kind: input, shape index: {}]   ;;  %s1006_s2 = inlined_call_operand.vmem [shape: f32[1,256], index: 2, kind: input, shape index: {}]   ;;  %s1007_s3 = inlined_call_operand.hbm [shape: bf16[256,256], index: 3, kind: input, shape index: {}]   ;;  %s1008_s4 = inlined_call_operand.vmem [shape: f32[1,256], index: 4, kind: input, shape index: {}]   ;;  %s1009_s5 = inlined_call_operand.hbm [shape: bf16[256,128], index: 5, kind: input, shape index: {}]   ;;  %s1010_s6 = inlined_call_operand.vmem [shape: f32[1,128], index: 6, kind: input, shape index: {}]   ;;  %s1011_s7 = inlined_call_operand.hbm [shape: f32[8,128], index: 7, kind: output, shape index: {}]  }
   0x1   :  { %13 = vsyncpa [#allocation6], 0 }
   0x2   :  { %14 = vsyncpa [#allocation9], 0 }
   0x3   :  { %15 = vsyncpa [#allocation4], 0  ;;  %s879_s24 = smov [#allocation5]   ;;  %s761_s28 = scalar_lea.hbm %s1005_s1, 256 }
   0x4   :  { %s31_s25 = sshll.u32 %s879_s24, 4  ;;  %p762_p0 = scmp.ne.s32.totalorder %s1005_s1, %s761_s28  ;;  %s32_s25 = int_to_ptr.vmem [resolvable:$true] %s31_s25 }
   0x5   :  { %p765_p1 = scmp.lt.u32.totalorder %s761_s28, %s1005_s1 }
   0x7   :  { %p767_p2 = pnand %p765_p1, %p762_p0 }
   0x9   :  { %770 = shalt.err (!%p767_p2)
}
   0xa   :  { %s771_s10 = scalar_lea.vmem %s32_s25, 256  ;;  %p776_p4 = scmp.lt.s32.totalorder %s32_s25, %s32_s25 }
   0xb   :  { %p772_p3 = scmp.ne.s32.totalorder %s32_s25, %s771_s10  ;;  %p777_p5 = scmp.lt.s32.totalorder %s771_s10, %s771_s10 }
   0xd   :  { %p778_p6 = por %p777_p5, %p776_p4 }
   0xf   :  { %p779_p7 = pnand %p778_p6, %p772_p3 }
  0x11   :  { %782 = shalt.err (!%p779_p7)
}
  0x12   :  { %s880_s11 = smov 128   ;;  %s881_s12 = smov 8  }
  0x13   :  { %37 = dma.hbm_to_vmem [thread:$0]  %s1005_s1, 256, %s32_s25, [#allocation6], %s880_s11, %s880_s11, %s881_s12  }
  0x14   :  { %s882_s15 = smov [#allocation2]   ;;  %s883_s17 = smov [#allocation7]  }
  0x15   :  { %s22_s16 = sshll.u32 %s882_s15, 4  ;;  %s45_s18 = sshll.u32 %s883_s17, 4  ;;  %s23_s16 = int_to_ptr.vmem [resolvable:$true] %s22_s16  ;;  %s46_s18 = int_to_ptr.vmem [resolvable:$true] %s45_s18 }
  0x16   :  { %s783_s21 = scalar_lea.hbm %s1004_s0, 64 }
  0x17   :  { %p784_p8 = scmp.ne.s32.totalorder %s1004_s0, %s783_s21  ;;  %p787_p9 = scmp.lt.u32.totalorder %s783_s21, %s1004_s0 }
  0x19   :  { %p789_p10 = pnand %p787_p9, %p784_p8 }
  0x1b   :  { %792 = shalt.err (!%p789_p10)
}
  0x1c   :  { %s793_s1 = scalar_lea.vmem %s23_s16, 64  ;;  %p798_p12 = scmp.lt.s32.totalorder %s23_s16, %s23_s16 }
  0x1d   :  { %p794_p11 = scmp.ne.s32.totalorder %s23_s16, %s793_s1  ;;  %p799_p13 = scmp.lt.s32.totalorder %s793_s1, %s793_s1 }
  0x1f   :  { %p800_p0 = por %p799_p13, %p798_p12 }
  0x21   :  { %p801_p1 = pnand %p800_p0, %p794_p11 }
  0x23   :  { %804 = shalt.err (!%p801_p1)
}
  0x24   :  { %25 = dma.hbm_to_vmem [thread:$0]  %s1004_s0, 64, %s23_s16, [#allocation3]  }
  0x25   :  { %s805_s30 = scalar_lea.hbm %s1007_s3, 4096 }
  0x26   :  { %p806_p2 = scmp.ne.s32.totalorder %s1007_s3, %s805_s30  ;;  %p809_p3 = scmp.lt.u32.totalorder %s805_s30, %s1007_s3 }
  0x28   :  { %p811_p4 = pnand %p809_p3, %p806_p2 }
  0x2a   :  { %814 = shalt.err (!%p811_p4)
}
  0x2b   :  { %s815_s14 = scalar_lea.vmem %s46_s18, 4096  ;;  %p820_p6 = scmp.lt.s32.totalorder %s46_s18, %s46_s18 }
  0x2c   :  { %p816_p5 = scmp.ne.s32.totalorder %s46_s18, %s815_s14  ;;  %p821_p7 = scmp.lt.s32.totalorder %s815_s14, %s815_s14 }
  0x2e   :  { %p822_p8 = por %p821_p7, %p820_p6 }
  0x30   :  { %p823_p9 = pnand %p822_p8, %p816_p5 }
  0x32   :  { %826 = shalt.err (!%p823_p9)
}
  0x33   :  { %51 = dma.hbm_to_vmem [thread:$0]  %s1007_s3, 4096, %s46_s18, [#allocation6], %s880_s11, %s880_s11, %s881_s12  }
  0x34   :  { %s884_s16 = smov [#allocation8]   ;;  %s827_s21 = scalar_lea.hbm %s1009_s5, 2048 }
  0x35   :  { %s59_s17 = sshll.u32 %s884_s16, 4  ;;  %p828_p10 = scmp.ne.s32.totalorder %s1009_s5, %s827_s21  ;;  %s60_s17 = int_to_ptr.vmem [resolvable:$true] %s59_s17 }
  0x36   :  { %p831_p11 = scmp.lt.u32.totalorder %s827_s21, %s1009_s5 }
  0x38   :  { %p833_p12 = pnand %p831_p11, %p828_p10 }
  0x3a   :  { %836 = shalt.err (!%p833_p12)
}
  0x3b   :  { %s837_s1 = scalar_lea.vmem %s60_s17, 2048  ;;  %p842_p0 = scmp.lt.s32.totalorder %s60_s17, %s60_s17 }
  0x3c   :  { %p838_p13 = scmp.ne.s32.totalorder %s60_s17, %s837_s1  ;;  %p843_p1 = scmp.lt.s32.totalorder %s837_s1, %s837_s1 }
  0x3e   :  { %p844_p2 = por %p843_p1, %p842_p0 }
  0x40   :  { %p845_p3 = pnand %p844_p2, %p838_p13 }
  0x42   :  { %848 = shalt.err (!%p845_p3)
}
  0x43   :  { %s885_s3 = smov 64   ;;  %s886_s11 = smov 4  }
  0x44   :  { %65 = dma.hbm_to_vmem [thread:$0]  %s1009_s5, 2048, %s60_s17, [#allocation9], %s885_s3, %s885_s3, %s886_s11  }
  0x45   :  { %871 = dma.done.wait [#allocation3], 64  }
  0x46   :  { %872 = vsyncadd [#allocation3], 4294967232 }
  0x47   :  { %873 = dma.done.wait [#allocation6], 4352  }
  0x48   :  { %874 = vsyncadd [#allocation6], 4294962944 }
  0x49   :  { %875 = dma.done.wait [#allocation9], 2048  }
  0x4a   :  { %876 = vsyncadd [#allocation9], 4294965248  ;;  %v887_v0 = vmov 0   ;;  %v690_v1 = vld [vmem:[#allocation5 + $0x4] ss:$8 sps:$4 sm:$0xff]   ;;  %vm106_vm0 = vcmask 130048   ;;  %v86_v48 = vlaneseq }
  0x4b   :  { %142 = vmatprep.mubr.bf16.mxu0 %v887_v0  ;;  %v692_v2 = vld [vmem:[#allocation5] ss:$8 sps:$4 sm:$0xff]   ;;  %v81_v3 = vld [vmem:[#allocation2] sm:$0xf]  ;;  %110 = vmatprep.subr.bf16.mxu0 %v690_v1  ;;  %v695_v5 = vld [vmem:[#allocation7] ss:$8 sps:$4 sm:$0xff]  }
  0x4c   :  { %v693_v4 = vld [vmem:[#allocation7 + $0x4] ss:$8 sps:$4 sm:$0xff]   ;;  %111 = vmatpush1.bf16.msra.mxu0 %v692_v2  ;;  %v696_v6 = vld [vmem:[#allocation7 + $0x14] ss:$8 sps:$4 sm:$0xff]   ;;  %v698_v7 = vld [vmem:[#allocation7 + $0x10] ss:$8 sps:$4 sm:$0xff]  }
  0x4d   :  { %359 = vmatprep.subr.bf16.mxu1 %v693_v4  ;;  %v699_v8 = vld [vmem:[#allocation7 + $0x24] ss:$8 sps:$4 sm:$0xff]   ;;  %v701_v9 = vld [vmem:[#allocation7 + $0x20] ss:$8 sps:$4 sm:$0xff]   ;;  %v702_v10 = vld [vmem:[#allocation7 + $0x34] ss:$8 sps:$4 sm:$0xff]  }
  0x4e   :  { %360 = vmatpush1.bf16.msra.mxu1 %v695_v5  ;;  %v704_v11 = vld [vmem:[#allocation7 + $0x30] ss:$8 sps:$4 sm:$0xff]   ;;  %v705_v12 = vld [vmem:[#allocation7 + $0x44] ss:$8 sps:$4 sm:$0xff]   ;;  %v707_v13 = vld [vmem:[#allocation7 + $0x40] ss:$8 sps:$4 sm:$0xff]  }
  0x4f   :  { %608 = vmatmul.mubr.msk.bf16.vlgmr.msra.gmra.mrb[0].mxu0 %vm106_vm0, %v81_v3  ;;  %361 = vmatprep.subr.bf16.mxu1 %v696_v6  ;;  %v708_v14 = vld [vmem:[#allocation7 + $0x54] ss:$8 sps:$4 sm:$0xff]   ;;  %v710_v15 = vld [vmem:[#allocation7 + $0x50] ss:$8 sps:$4 sm:$0xff]   ;;  %v711_v16 = vld [vmem:[#allocation7 + $0x64] ss:$8 sps:$4 sm:$0xff]  }
  0x50   :  { %v713_v17 = vld [vmem:[#allocation7 + $0x60] ss:$8 sps:$4 sm:$0xff]   ;;  %v714_v18 = vld [vmem:[#allocation7 + $0x74] ss:$8 sps:$4 sm:$0xff]   ;;  %v716_v19 = vld [vmem:[#allocation7 + $0x70] ss:$8 sps:$4 sm:$0xff]  }
  0x51   :  { %v717_v20 = vld [vmem:[#allocation7 + $0x84] ss:$8 sps:$4 sm:$0xff]   ;;  %v719_v21 = vld [vmem:[#allocation7 + $0x80] ss:$8 sps:$4 sm:$0xff]   ;;  %v720_v22 = vld [vmem:[#allocation7 + $0x94] ss:$8 sps:$4 sm:$0xff]  }
  0x52   :  { %362 = vmatpush1.bf16.msra.mxu1 %v698_v7  ;;  %v722_v23 = vld [vmem:[#allocation7 + $0x90] ss:$8 sps:$4 sm:$0xff]   ;;  %v723_v24 = vld [vmem:[#allocation7 + $0xa4] ss:$8 sps:$4 sm:$0xff]   ;;  %v725_v25 = vld [vmem:[#allocation7 + $0xa0] ss:$8 sps:$4 sm:$0xff]  }
  0x53   :  { %363 = vmatprep.subr.bf16.mxu1 %v699_v8  ;;  %v726_v26 = vld [vmem:[#allocation7 + $0xb4] ss:$8 sps:$4 sm:$0xff]   ;;  %v728_v27 = vld [vmem:[#allocation7 + $0xb0] ss:$8 sps:$4 sm:$0xff]   ;;  %v729_v28 = vld [vmem:[#allocation7 + $0xc4] ss:$8 sps:$4 sm:$0xff]  }
  0x54   :  { %v731_v29 = vld [vmem:[#allocation7 + $0xc0] ss:$8 sps:$4 sm:$0xff]   ;;  %v732_v30 = vld [vmem:[#allocation7 + $0xd4] ss:$8 sps:$4 sm:$0xff]   ;;  %v734_v31 = vld [vmem:[#allocation7 + $0xd0] ss:$8 sps:$4 sm:$0xff]  }
  0x55   :  { %v735_v32 = vld [vmem:[#allocation7 + $0xe4] ss:$8 sps:$4 sm:$0xff]   ;;  %v737_v33 = vld [vmem:[#allocation7 + $0xe0] ss:$8 sps:$4 sm:$0xff]   ;;  %v738_v34 = vld [vmem:[#allocation7 + $0xf4] ss:$8 sps:$4 sm:$0xff]  }
  0x56   :  { %364 = vmatpush1.bf16.msra.mxu1 %v701_v9  ;;  %v740_v35 = vld [vmem:[#allocation7 + $0xf0] ss:$8 sps:$4 sm:$0xff]   ;;  %v741_v36 = vld [vmem:[#allocation8 + $0x40] sm:$0xff]   ;;  %v743_v38 = vld [vmem:[#allocation8 + $0x48] sm:$0xff]   ;;  %v87_v49 = vshrl.u32 %v86_v48, 7 }
  0x57   :  { %365 = vmatprep.subr.bf16.mxu1 %v702_v10  ;;  %v742_v37 = vld [vmem:[#allocation8] sm:$0xff]   ;;  %658 = vmatprep.subr.bf16.mxu0 %v741_v36  ;;  %v744_v39 = vld [vmem:[#allocation8 + $0x8] sm:$0xff]   ;;  %v745_v40 = vld [vmem:[#allocation8 + $0x50] sm:$0xff]  }
  0x58   :  { %659 = vmatpush3.bf16.msra.mxu0 %v742_v37  ;;  %v746_v41 = vld [vmem:[#allocation8 + $0x10] sm:$0xff]   ;;  %v747_v42 = vld [vmem:[#allocation8 + $0x58] sm:$0xff]   ;;  %v749_v44 = vld [vmem:[#allocation8 + $0x60] sm:$0xff]   ;;  %v88_v50 = vsub.s32 0, %v87_v49  ;;  %v92_v52 = vsub.s32 1, %v87_v49 }
  0x59   :  { %660 = vmatprep.subr.bf16.mxu0 %v743_v38  ;;  %v748_v43 = vld [vmem:[#allocation8 + $0x18] sm:$0xff]   ;;  %v750_v45 = vld [vmem:[#allocation8 + $0x20] sm:$0xff]   ;;  %v751_v46 = vld [vmem:[#allocation8 + $0x68] sm:$0xff]  }
  0x5a   :  { %366 = vmatpush1.bf16.msra.mxu1 %v704_v11  ;;  %v752_v47 = vld [vmem:[#allocation8 + $0x28] sm:$0xff]   ;;  %v753_v1 = vld [vmem:[#allocation8 + $0x70] sm:$0xff]   ;;  %v755_v3 = vld [vmem:[#allocation8 + $0x78] sm:$0xff]  }
  0x5b   :  { %367 = vmatprep.subr.bf16.mxu1 %v705_v12  ;;  %v84_v51 = vld [vmem:[%s1006_s2] sm:$0x3]  ;;  %v754_v2 = vld [vmem:[#allocation8 + $0x30] sm:$0xff]   ;;  %v756_v4 = vld [vmem:[#allocation8 + $0x38] sm:$0xff]  }
  0x5c   :  { %661 = vmatpush3.bf16.msra.mxu0 %v744_v39  ;;  %v89_v53 = vrot.slane %v84_v51, %v88_v50  ;;  %v93_v54 = vrot.slane %v84_v51, %v92_v52  ;;  %v187_v5 = vld [vmem:[%s1008_s4] sm:$0x3]  ;;  %s888_s4 = smov [#allocation10]  }
  0x5d   :  { %662 = vmatprep.subr.bf16.mxu0 %v745_v40  ;;  %v192_v6 = vrot.slane %v187_v5, %v88_v50  ;;  %v196_v7 = vrot.slane %v187_v5, %v92_v52  ;;  %s595_s30 = sshll.u32 %s888_s4, 4  ;;  %s596_s30 = int_to_ptr.vmem [resolvable:$true] %s595_s30 }
  0x5e   :  { %368 = vmatpush1.bf16.msra.mxu1 %v707_v13  ;;  %p854_p5 = scmp.lt.s32.totalorder %s596_s30, %s596_s30 }
  0x5f   :  { %369 = vmatprep.subr.bf16.mxu1 %v708_v14 }
  0x60   :  { %663 = vmatpush3.bf16.msra.mxu0 %v746_v41 }
  0x61   :  { %664 = vmatprep.subr.bf16.mxu0 %v747_v42 }
  0x62   :  { %370 = vmatpush1.bf16.msra.mxu1 %v710_v15 }
  0x63   :  { %371 = vmatprep.subr.bf16.mxu1 %v711_v16 }
  0x64   :  { %665 = vmatpush3.bf16.msra.mxu0 %v748_v43 }
  0x65   :  { %666 = vmatprep.subr.bf16.mxu0 %v749_v44 }
  0x66   :  { %372 = vmatpush1.bf16.msra.mxu1 %v713_v17 }
  0x67   :  { %373 = vmatprep.subr.bf16.mxu1 %v714_v18 }
  0x68   :  { %667 = vmatpush3.bf16.msra.mxu0 %v750_v45 }
  0x69   :  { %668 = vmatprep.subr.bf16.mxu0 %v751_v46 }
  0x6a   :  { %374 = vmatpush1.bf16.msra.mxu1 %v716_v19 }
  0x6b   :  { %375 = vmatprep.subr.bf16.mxu1 %v717_v20  ;;  %v641_v20 = vld [vmem:[%s1010_s6] ss:$0 sm:$0xff]  ;;  %s849_s6 = scalar_lea.vmem %s596_s30, 128 }
  0x6c   :  { %669 = vmatpush3.bf16.msra.mxu0 %v752_v47  ;;  %p850_p4 = scmp.ne.s32.totalorder %s596_s30, %s849_s6  ;;  %p855_p6 = scmp.lt.s32.totalorder %s849_s6, %s849_s6 }
  0x6d   :  { %670 = vmatprep.subr.bf16.mxu0 %v753_v1 }
  0x6e   :  { %376 = vmatpush1.bf16.msra.mxu1 %v719_v21  ;;  %p856_p7 = por %p855_p6, %p854_p5 }
  0x6f   :  { %377 = vmatprep.subr.bf16.mxu1 %v720_v22 }
  0x70   :  { %671 = vmatpush3.bf16.msra.mxu0 %v754_v2  ;;  %p857_p8 = pnand %p856_p7, %p850_p4 }
  0x71   :  { %672 = vmatprep.subr.bf16.mxu0 %v755_v3 }
  0x72   :  { %378 = vmatpush1.bf16.msra.mxu1 %v722_v23 }
  0x73   :  { %379 = vmatprep.subr.bf16.mxu1 %v723_v24 }
  0x74   :  { %673 = vmatpush3.bf16.msra.mxu0 %v756_v4 }
  0x76   :  { %380 = vmatpush1.bf16.msra.mxu1 %v725_v25 }
  0x77   :  { %381 = vmatprep.subr.bf16.mxu1 %v726_v26 }
  0x7a   :  { %382 = vmatpush1.bf16.msra.mxu1 %v728_v27 }
  0x7b   :  { %383 = vmatprep.subr.bf16.mxu1 %v729_v28 }
  0x7e   :  { %384 = vmatpush1.bf16.msra.mxu1 %v731_v29 }
  0x7f   :  { %385 = vmatprep.subr.bf16.mxu1 %v732_v30 }
  0x82   :  { %386 = vmatpush1.bf16.msra.mxu1 %v734_v31 }
  0x83   :  { %387 = vmatprep.subr.bf16.mxu1 %v735_v32 }
  0x86   :  { %388 = vmatpush1.bf16.msra.mxu1 %v737_v33 }
  0x87   :  { %389 = vmatprep.subr.bf16.mxu1 %v738_v34 }
  0x8a   :  { %390 = vmatpush1.bf16.msra.mxu1 %v740_v35 }
 0x122   :  { %v144_v55 = vpop.f32.mrb[0].mxu0 }
 0x123   :  { %v145_v56 = vadd.f32 %v144_v55, %v89_v53  ;;  %v146_v57 = vpop.f32.mrb[1].mxu0 }
 0x124   :  { %v147_v58 = vadd.f32 %v146_v57, %v93_v54  ;;  %v148_v59 = vpop.f32.mrb[2].mxu0 }
 0x125   :  { %v151_v60 = vmax.f32 %v145_v56, 0.0  ;;  %v149_v61 = vpop.f32.mrb[3].mxu0 }
 0x126   :  { %v152_v62 = vmax.f32 %v147_v58, 0.0 }
 0x127   :  { %v153_v0 = vpack.c.bf16 %v151_v60, %v151_v60 }
 0x128   :  { %v154_v63 = vpack.c.bf16 %v152_v62, %v152_v62 }
 0x12a   :  { %391 = vmatprep.mubr.bf16.mxu1 %v154_v63 }
 0x12b   :  { %392 = vmatmul.mubr.bf16.vlgmr.msra.gmra.mrb[0].mxu1 %v153_v0 }
 0x1fe   :  { %v393_v8 = vpop.f32.mrb[0].mxu1 }
 0x1ff   :  { %v394_v9 = vadd.f32 %v393_v8, %v192_v6  ;;  %v395_v10 = vpop.f32.mrb[1].mxu1 }
 0x200   :  { %v396_v11 = vadd.f32 %v395_v10, %v196_v7  ;;  %v397_v12 = vpop.f32.mrb[2].mxu1 }
 0x201   :  { %v400_v13 = vmax.f32 %v394_v9, 0.0  ;;  %v398_v14 = vpop.f32.mrb[3].mxu1 }
 0x202   :  { %v401_v15 = vmax.f32 %v396_v11, 0.0 }
 0x203   :  { %v402_v17 = vpack.c.bf16 %v400_v13, %v400_v13 }
 0x204   :  { %v403_v16 = vpack.c.bf16 %v401_v15, %v401_v15 }
 0x206   :  { %571 = vmatprep.mubr.bf16.mxu0 %v403_v16 }
 0x207   :  { %572 = vmatmul.mubr.bf16.vlgmr.msra.gmra.mrb[4].mxu0 %v402_v17 }
 0x2da   :  { %v674_v18 = vpop.f32.mrb[4].mxu0 }
 0x2db   :  { %v675_v19 = vpop.f32.mrb[5].mxu0 }
 0x2dc   :  { %v676_v21 = vadd.f32 %v675_v19, %v674_v18  ;;  %v677_v22 = vpop.f32.mrb[6].mxu0 }
 0x2dd   :  { %v678_v23 = vpop.f32.mrb[7].mxu0 }
 0x2de   :  { %v574_v24 = vadd.f32 %v676_v21, %v641_v20 }
 0x2e0   :  { %579 = vmax.xlane.f32.xlu0 %v574_v24 }
 0x36d   :  { %v580_v25 = vpop.xlane.xlu0 %579 }
 0x36e   :  { %v581_v26 = vsub.f32 %v574_v24, %v580_v25 }
 0x370   :  { %v582_v27 = vmul.f32 1.442695, %v581_v26 }
 0x372   :  { %757 = vpow2.f32 %v582_v27 }
 0x37c   :  { %v758_v28 = vpop.eup %757 }
 0x37d   :  { %584 = vadd.xlane.f32.xlu0 %v758_v28 }
 0x40a   :  { %v585_v29 = vpop.xlane.xlu0 %584 }
 0x40b   :  { %759 = vrcp.f32 %v585_v29 }
 0x415   :  { %v760_v30 = vpop.eup %759 }
 0x416   :  { %v587_v31 = vmul.f32 %v760_v30, %v758_v28 }
 0x418   :  { %588 = vst [vmem:[#allocation10] sm:$0xff] %v587_v31 }
 0x419   :  { %860 = shalt.err (!%p857_p8)
}
 0x41a   :  { %s861_s10 = scalar_lea.hbm %s1011_s7, 128 }
 0x41b   :  { %p862_p9 = scmp.ne.s32.totalorder %s1011_s7, %s861_s10  ;;  %p865_p10 = scmp.lt.u32.totalorder %s861_s10, %s1011_s7 }
 0x41d   :  { %p867_p11 = pnand %p865_p10, %p862_p9 }
 0x41f   :  { %870 = shalt.err (!%p867_p11)
}
 0x420   :  { %598 = dma.vmem_to_hbm [thread:$0]  %s596_s30, 128, %s1011_s7, [#allocation4]  }
 0x421   :  { %877 = dma.done.wait [#allocation4], 128  }
 0x422   :  { %878 = vsyncadd [#allocation4], 4294967168 }
 0x423   :  { %602 = vsyncpa [#allocation3], 1 }
 0x424   :  { %603 = vsyncpa [#allocation6], 1 }
 0x425   :  { %604 = vsyncpa [#allocation9], 1 }
 0x426   :  { %605 = vsyncpa [#allocation4], 1 }

</bundles_post_ra>
